<compile_context>
chip_gen: v7x
topology: tpu7x:2x2x1
jax: 0.10.0
libtpu: 0.0.40
codegen_flags: <defaults>
</compile_context>

<pallas_src>
import jax
import jax.numpy as jnp
from jax.experimental import pallas as pl
from jax.experimental.pallas import tpu as pltpu


def _aff_kernel(x_ref, alpha_ref, beta_ref, o_ref):
    # x_ref/o_ref: (TM, Dp) row tile; alpha_ref/beta_ref: (1, Dp) shared params.
    a = alpha_ref[...]                      # loaded once per grid step
    b = beta_ref[...]
    x = x_ref[...]
    o_ref[...] = (x * a + b).astype(o_ref.dtype)


def aff_forward(x, alpha, beta):
    """x: (B, S, D); alpha, beta: (1, 1, D). Returns x * alpha + beta."""
    B, S, D = x.shape
    assert alpha.shape == (1, 1, D) and beta.shape == (1, 1, D)

    N = B * S
    x2 = x.reshape(N, D)
    a1 = alpha.reshape(D)
    b1 = beta.reshape(D)

    # ---- Lane-dense repack: fold R rows into the 128-wide lane axis. -------
    R = 1
    if D < 128 and (128 % D == 0) and (N % (128 // D) == 0):
        R = 128 // D
    Dp = D * R
    Np = N // R
    x2 = x2.reshape(Np, Dp)
    a2 = jnp.tile(a1, (R,)).reshape(1, Dp)
    b2 = jnp.tile(b1, (R,)).reshape(1, Dp)

    # ---- Row-tile size: big, sublane-aligned, within VMEM budget. ----------
    itemsize = jnp.dtype(x.dtype).itemsize
    sub = max(8, 32 // itemsize)            # 8 rows (f32), 16 (bf16), 32 (i8)
    tile_budget = 3 * 1024 * 1024           # bytes per x tile (x+o, 2x buffered -> ~12 MiB)
    tm_cap = max(sub, (tile_budget // max(1, Dp * itemsize)) // sub * sub)
    TM = min(Np, 2048, tm_cap)
    if TM < Np:
        TM = max(sub, (TM // sub) * sub)    # keep sublane alignment for partial tiling

    grid = (pl.cdiv(Np, TM),)

    out2 = pl.pallas_call(
        _aff_kernel,
        out_shape=jax.ShapeDtypeStruct((Np, Dp), x.dtype),
        grid=grid,
        in_specs=[
            pl.BlockSpec((TM, Dp), lambda i: (i, 0)),   # x row tile
            pl.BlockSpec((1, Dp), lambda i: (0, 0)),    # alpha (shared, constant index)
            pl.BlockSpec((1, Dp), lambda i: (0, 0)),    # beta  (shared, constant index)
        ],
        out_specs=pl.BlockSpec((TM, Dp), lambda i: (i, 0)),
        compiler_params=pltpu.CompilerParams(
            dimension_semantics=("parallel",),          # many steps -> megacore sharding on v7x
            vmem_limit_bytes=32 * 1024 * 1024,          # raise v5e's 16 MiB default; safe on v6e/v7x
        ),
    )(x2, a2, b2)

    return out2.reshape(B, S, D)


if __name__ == "__main__":
    # Small shapes consistent with the module: x of shape [batch, seq, dim].
    B, S, D = 2, 8, 32

    key = jax.random.PRNGKey(0)
    kx, ka, kb = jax.random.split(key, 3)

    x = jax.random.normal(kx, (B, S, D), dtype=jnp.float32)

    # PyTorch init is ones/zeros; perturb a bit so the affine is non-trivial
    # while staying deterministic.
    alpha = jnp.ones((1, 1, D), jnp.float32) + 0.1 * jax.random.normal(ka, (1, 1, D), jnp.float32)
    beta = jnp.zeros((1, 1, D), jnp.float32) + 0.1 * jax.random.normal(kb, (1, 1, D), jnp.float32)

    out = aff_forward(x, alpha, beta)
    out = jax.block_until_ready(out)

    # Reference check against plain-JAX broadcasting (same as PyTorch semantics).
    ref = x * alpha + beta
    assert out.shape == x.shape and out.dtype == x.dtype
    assert jnp.allclose(out, ref, atol=1e-6, rtol=1e-6)

    print("KERNEL_OK")
</pallas_src>

<mosaic_0001>
module attributes {stable_mosaic.version = 11 : i64} {
  func.func @_aff_kernel(%arg0: i32, %arg1: memref<4x128xf32, #tpu.memory_space<vmem>>, %arg2: memref<1x128xf32, #tpu.memory_space<vmem>>, %arg3: memref<1x128xf32, #tpu.memory_space<vmem>>, %arg4: memref<4x128xf32, #tpu.memory_space<vmem>>) attributes {dimension_semantics = [#tpu.dimension_semantics<parallel>], iteration_bounds = array<i64: 1>, scalar_prefetch = 0 : i64, scratch_operands = 0 : i64, tpu.core_type = #tpu.core_type<tc>, window_params = [{transform_indices = @transform_0, window_bounds = array<i64: 4, 128>}, {pipeline_mode = #tpu.pipeline_mode<synchronous>, transform_indices = @transform_1, window_bounds = array<i64: 1, 128>}, {pipeline_mode = #tpu.pipeline_mode<synchronous>, transform_indices = @transform_2, window_bounds = array<i64: 1, 128>}, {transform_indices = @transform_3, window_bounds = array<i64: 4, 128>}]} {
    %c0 = arith.constant 0 : index
    %c0_0 = arith.constant 0 : index
    %0 = vector.load %arg2[%c0, %c0_0] : memref<1x128xf32, #tpu.memory_space<vmem>>, vector<1x128xf32>
    %c0_1 = arith.constant 0 : index
    %c0_2 = arith.constant 0 : index
    %1 = vector.load %arg3[%c0_1, %c0_2] : memref<1x128xf32, #tpu.memory_space<vmem>>, vector<1x128xf32>
    %c0_3 = arith.constant 0 : index
    %c0_4 = arith.constant 0 : index
    %2 = vector.load %arg1[%c0_3, %c0_4] : memref<4x128xf32, #tpu.memory_space<vmem>>, vector<4x128xf32>
    %3 = vector.broadcast %0 : vector<1x128xf32> to vector<4x128xf32>
    %4 = arith.mulf %2, %3 : vector<4x128xf32>
    %5 = vector.broadcast %1 : vector<1x128xf32> to vector<4x128xf32>
    %6 = arith.addf %4, %5 : vector<4x128xf32>
    %c0_5 = arith.constant 0 : index
    %c0_6 = arith.constant 0 : index
    %7 = vector.load %arg4[%c0_5, %c0_6] : memref<4x128xf32, #tpu.memory_space<vmem>>, vector<4x128xf32>
    tpu.vector_store %arg4[%c0_5, %c0_6], %6 {strides = array<i32>} : memref<4x128xf32, #tpu.memory_space<vmem>>, vector<4x128xf32>,
    return
  }
  func.func @transform_0(%arg0: i32) -> (i32, i32) {
    %c0_i32 = arith.constant 0 : i32
    %c0_i32_0 = arith.constant 0 : i32
    return %arg0, %c0_i32 : i32, i32
  }
  func.func @transform_1(%arg0: i32) -> (i32, i32) {
    %c0_i32 = arith.constant 0 : i32
    %c0_i32_0 = arith.constant 0 : i32
    %c0_i32_1 = arith.constant 0 : i32
    return %c0_i32, %c0_i32_0 : i32, i32
  }
  func.func @transform_2(%arg0: i32) -> (i32, i32) {
    %c0_i32 = arith.constant 0 : i32
    %c0_i32_0 = arith.constant 0 : i32
    %c0_i32_1 = arith.constant 0 : i32
    return %c0_i32, %c0_i32_0 : i32, i32
  }
  func.func @transform_3(%arg0: i32) -> (i32, i32) {
    %c0_i32 = arith.constant 0 : i32
    %c0_i32_0 = arith.constant 0 : i32
    return %arg0, %c0_i32 : i32, i32
  }
}

</mosaic_0001>

<bundles_post_ra>
// kernel: tpu_custom_call.1
= control target key start
LH: loop header
LB: loop body
LE: loop exit
PB: predicated region body
PF: predicated region fallthrough
CT: control target
= control target key end

     0   :  { %8 = vsyncpa [#allocation3], 0  ;;  %s164_s0 = inlined_call_operand.hbm [shape: f32[4,128], index: 0, kind: input, shape index: {}]   ;;  %s165_s1 = inlined_call_operand.vmem [shape: f32[1,128], index: 1, kind: input, shape index: {}]   ;;  %s166_s2 = inlined_call_operand.vmem [shape: f32[1,128], index: 2, kind: input, shape index: {}]   ;;  %s167_s3 = inlined_call_operand.hbm [shape: f32[4,128], index: 3, kind: output, shape index: {}]  }
   0x1   :  { %9 = vsyncpa [#allocation4], 0  ;;  %s112_s12 = smov [#allocation2]   ;;  %s64_s16 = scalar_lea.hbm %s164_s0, 64 }
   0x2   :  { %s16_s13 = sshll.u32 %s112_s12, 4  ;;  %p65_p0 = scmp.ne.s32.totalorder %s164_s0, %s64_s16  ;;  %s17_s13 = int_to_ptr.vmem [resolvable:$true] %s16_s13 }
   0x3   :  { %p68_p1 = scmp.lt.u32.totalorder %s64_s16, %s164_s0 }
   0x5   :  { %p70_p2 = pnand %p68_p1, %p65_p0 }
   0x7   :  { %73 = shalt.err (!%p70_p2)
}
   0x8   :  { %s74_s21 = scalar_lea.vmem %s17_s13, 64  ;;  %p79_p4 = scmp.lt.s32.totalorder %s17_s13, %s17_s13 }
   0x9   :  { %p75_p3 = scmp.ne.s32.totalorder %s17_s13, %s74_s21  ;;  %p80_p5 = scmp.lt.s32.totalorder %s74_s21, %s74_s21 }
   0xb   :  { %p81_p6 = por %p80_p5, %p79_p4 }
   0xd   :  { %p82_p7 = pnand %p81_p6, %p75_p3 }
   0xf   :  { %85 = shalt.err (!%p82_p7)
}
  0x10   :  { %19 = dma.hbm_to_vmem [thread:$0]  %s164_s0, 64, %s17_s13, [#allocation3]  }
  0x11   :  { %108 = dma.done.wait [#allocation3], 64  }
  0x12   :  { %109 = vsyncadd [#allocation3], 4294967232  ;;  %s113_s24 = smov [#allocation5]   ;;  %v60_v0 = vld [vmem:[%s165_s1] ss:$0 sm:$0xff] }
  0x13   :  { %s51_s25 = sshll.u32 %s113_s24, 4  ;;  %v61_v1 = vld [vmem:[%s166_s2] ss:$0 sm:$0xff]  ;;  %s52_s25 = int_to_ptr.vmem [resolvable:$true] %s51_s25 }
  0x14   :  { %v29_v2 = vld [vmem:[#allocation2] sm:$0xf]  ;;  %s86_s30 = scalar_lea.vmem %s52_s25, 64  ;;  %p91_p9 = scmp.lt.s32.totalorder %s52_s25, %s52_s25 }
  0x15   :  { %v36_v3 = vmul.f32 %v60_v0, %v29_v2  ;;  %p87_p8 = scmp.ne.s32.totalorder %s52_s25, %s86_s30  ;;  %p92_p10 = scmp.lt.s32.totalorder %s86_s30, %s86_s30 }
  0x17   :  { %v43_v4 = vadd.f32 %v61_v1, %v36_v3  ;;  %p93_p11 = por %p92_p10, %p91_p9 }
  0x19   :  { %44 = vst [vmem:[#allocation5] sm:$0xf] %v43_v4  ;;  %p94_p12 = pnand %p93_p11, %p87_p8 }
  0x1b   :  { %97 = shalt.err (!%p94_p12)
}
  0x1c   :  { %s98_s1 = scalar_lea.hbm %s167_s3, 64 }
  0x1d   :  { %p99_p13 = scmp.ne.s32.totalorder %s167_s3, %s98_s1  ;;  %p102_p0 = scmp.lt.u32.totalorder %s98_s1, %s167_s3 }
  0x1f   :  { %p104_p1 = pnand %p102_p0, %p99_p13 }
  0x21   :  { %107 = shalt.err (!%p104_p1)
}
  0x22   :  { %54 = dma.vmem_to_hbm [thread:$0]  %s52_s25, 64, %s167_s3, [#allocation4]  }
  0x23   :  { %110 = dma.done.wait [#allocation4], 64  }
  0x24   :  { %111 = vsyncadd [#allocation4], 4294967232 }
  0x25   :  { %58 = vsyncpa [#allocation3], 1 }
  0x26   :  { %59 = vsyncpa [#allocation4], 1 }

</bundles_post_ra>
